<compile_context>
chip_gen: v5e
topology: v5e:2x2
jax: 0.10.0
libtpu: 0.0.40
codegen_flags: <defaults>
</compile_context>

<pallas_src>
import numpy as np
import jax
import jax.numpy as jnp
from jax.experimental import pallas as pl
from jax.experimental.pallas import tpu as pltpu


def _round_up(x, m):
    return (x + m - 1) // m * m


def _vmem_budget_bytes():
    """~80% of this generation's physical VMEM (headroom for compiler scratch)."""
    try:
        cap = int(pltpu.get_tpu_info().vmem_capacity_bytes)
    except Exception:
        cap = 64 * 2**20          # conservative fallback (v7x per-TC)
    return int(0.8 * cap)


# ---------------------------------------------------------------------------
# Kernel
# ---------------------------------------------------------------------------
def classifier_kernel(x_ref, wri_ref, wf_ref, bf_ref, w1_ref, b1_ref,
                      w2_ref, b2_ref, w3_ref, b3_ref, out_ref):
    """One (TILE_B, K) tile of x -> (TILE_B, OUT_PAD) bf16 logits slab."""
    x = x_ref[...].astype(jnp.bfloat16)

    # Fused (softmax d1/d2 reduction) x (half-spectrum DFT): one lane-dense
    # bf16 MXU matmul with f32 accumulation.  Columns are [cos | -sin]; each
    # half is padded to a 128-lane boundary so re/im slices are free views.
    ri = jnp.dot(x, wri_ref[...], preferred_element_type=jnp.float32)
    lh_pad = wri_ref.shape[1] // 2          # multiple of 128
    re = ri[:, :lh_pad]
    im = ri[:, lh_pad:]
    mag = jnp.sqrt(re * re + im * im)       # (TILE_B, lh_pad), lane-dense

    # freq_mapping (real-FFT mirror folded in; zero rows past Lh) + MLP head.
    h = jnp.dot(mag.astype(jnp.bfloat16), wf_ref[...],
                preferred_element_type=jnp.float32) + bf_ref[...]
    h = jnp.maximum(
        jnp.dot(h.astype(jnp.bfloat16), w1_ref[...],
                preferred_element_type=jnp.float32) + b1_ref[...], 0.0)
    h = jnp.maximum(
        jnp.dot(h.astype(jnp.bfloat16), w2_ref[...],
                preferred_element_type=jnp.float32) + b2_ref[...], 0.0)
    y = jnp.dot(h.astype(jnp.bfloat16), w3_ref[...],
                preferred_element_type=jnp.float32) + b3_ref[...]
    out_ref[...] = y.astype(out_ref.dtype)  # bf16 slab: halves HBM writeback


# ---------------------------------------------------------------------------
# Parameter init (torch-layout shapes)
# ---------------------------------------------------------------------------
def init_params(key, d1, d2, length, num_classes, hidden_dim):
    ks = jax.random.split(key, 12)

    def linear(kw, kb, out_f, in_f):
        bound = 1.0 / np.sqrt(in_f)
        w = jax.random.uniform(kw, (out_f, in_f), jnp.float32, -bound, bound)
        b = jax.random.uniform(kb, (out_f,), jnp.float32, -bound, bound)
        return w, b

    p = {}
    p["weight_d2"] = jax.random.normal(ks[0], (d2, 1), jnp.float32)
    p["weight_d1"] = jax.random.normal(ks[1], (d1, 1), jnp.float32)
    p["wf"], p["bf"] = linear(ks[2], ks[3], hidden_dim, length)               # freq_mapping
    p["w1"], p["b1"] = linear(ks[4], ks[5], hidden_dim // 2, hidden_dim)      # classifier[0]
    p["w2"], p["b2"] = linear(ks[6], ks[7], hidden_dim // 4, hidden_dim // 2) # classifier[2]
    p["w3"], p["b3"] = linear(ks[8], ks[9], num_classes, hidden_dim // 4)     # classifier[4]
    return p


# ---------------------------------------------------------------------------
# One-time constant folding (hoisted out of the per-call path)
# ---------------------------------------------------------------------------
def prepare_classifier(p, L, d1, d2):
    """Fold the Classifier weights into kernel-ready, lane-padded, mostly-bf16
    matrices.  Call once and reuse.  Assumes real-valued x (the real-FFT
    mirror |X[L-k]| == |X[k]| is folded into freq_mapping)."""
    bf16 = jnp.bfloat16
    K = L * d1 * d2
    H = p["wf"].shape[0]
    num_classes = p["w3"].shape[0]
    Lh = L // 2 + 1
    Lh_pad = _round_up(Lh, 128)             # lane-aligned re/im halves
    out_pad = _round_up(num_classes, 128)   # lane-dense output slab

    # softmax over the d2/d1 mixing weights, flattened outer product.
    wd2 = jax.nn.softmax(p["weight_d2"][:, 0])
    wd1 = jax.nn.softmax(p["weight_d1"][:, 0])
    wd = jnp.outer(wd1, wd2).reshape(-1)    # (d1*d2,), matches x flatten order

    # half-spectrum DFT basis, [cos | -sin], each half zero-padded to Lh_pad.
    n = jnp.arange(L, dtype=jnp.float32)
    k = jnp.arange(Lh, dtype=jnp.float32)
    ang = 2.0 * jnp.pi * jnp.outer(n, k) / L                        # (L, Lh)
    cos_p = jnp.zeros((L, Lh_pad), jnp.float32).at[:, :Lh].set(jnp.cos(ang))
    sin_p = jnp.zeros((L, Lh_pad), jnp.float32).at[:, :Lh].set(-jnp.sin(ang))
    dft_ri = jnp.concatenate([cos_p, sin_p], axis=1)                # (L, 2*Lh_pad)
    # fused (reduction (x) DFT) matrix: reduced @ dft == x_flat @ w_ri
    w_ri = (dft_ri[:, None, :] * wd[None, :, None]).reshape(K, 2 * Lh_pad)
    # TODO(synk): for very large K (w_ri no longer VMEM-resident, esp. v7x's
    # 64 MiB/TC), add an "arbitrary" K grid axis streaming w_ri tiles into an
    # f32 VMEM accumulator for x@w_ri and keep sqrt+MLP in a last-step pl.when.

    # fold real-FFT mirror symmetry into freq_mapping; pad rows to Lh_pad.
    wf_t = p["wf"].T.astype(jnp.float32)                            # (L, H)
    mirror = wf_t[Lh:][::-1]                                        # rows L-1..Lh
    wf_fold = wf_t[:Lh].at[1:1 + mirror.shape[0]].add(mirror)       # (Lh, H)
    wf_pad = jnp.zeros((Lh_pad, H), jnp.float32).at[:Lh].set(wf_fold)

    # pad classifier output to a 128-wide lane-dense slab.
    w3_t = jnp.zeros((p["w3"].shape[1], out_pad), jnp.float32)
    w3_t = w3_t.at[:, :num_classes].set(p["w3"].T)
    b3_p = jnp.zeros((1, out_pad), jnp.float32).at[:, :num_classes].set(p["b3"])

    weights = (
        w_ri.astype(bf16),
        wf_pad.astype(bf16), p["bf"].reshape(1, H).astype(jnp.float32),
        p["w1"].T.astype(bf16), p["b1"].reshape(1, -1).astype(jnp.float32),
        p["w2"].T.astype(bf16), p["b2"].reshape(1, -1).astype(jnp.float32),
        w3_t.astype(bf16), b3_p,
    )
    meta = dict(K=K, num_classes=num_classes, out_pad=out_pad)
    return weights, meta


# ---------------------------------------------------------------------------
# Forward wrapper
# ---------------------------------------------------------------------------
def classifier_forward(x, prepared, *, tile_b=None):
    """Streams x through the Pallas kernel.  x may be f32 or bf16 — passing a
    bf16 x (cast by the upstream producer, before it lands in HBM) halves the
    dominant HBM read traffic; the kernel casts to bf16 for the MXU anyway."""
    weights, meta = prepared
    B = x.shape[0]
    K = meta["K"]
    out_pad = meta["out_pad"]
    x_flat = x.reshape(B, K)                       # free row-major view

    budget = _vmem_budget_bytes()
    res_bytes = sum(int(np.prod(a.shape)) * a.dtype.itemsize for a in weights)
    # streamed bytes per row: double-buffered x tile + bf16 output slab tile
    row_bytes = 2 * (K * x_flat.dtype.itemsize + out_pad * 2)
    stream_budget = budget - 2 * res_bytes - (1 << 20)

    # --- batch tile: large (amortize ~0.35us/step, ~85% HBM roofline >=512),
    #     >=2 grid steps when possible (v7x megacore), VMEM-bounded.
    if tile_b is None:
        tile_b = 1024
    if B <= 8:
        tile_b = B                                  # single full-dim block
    else:
        tile_b = min(tile_b, _round_up(B, 8))
        if pl.cdiv(B, tile_b) < 2:                  # keep both v7x TCs busy
            tile_b = _round_up(pl.cdiv(B, 2), 8)
        if stream_budget > 0:
            tile_b = min(tile_b, max(8, (stream_budget // row_bytes) // 8 * 8))
    tile_b = max(1, tile_b)

    vmem_limit = int(min(budget,
                         max(2 * res_bytes + tile_b * row_bytes + (2 << 20),
                             16 << 20)))

    # No jnp.pad copy of x: partial last block is masked by Pallas; garbage
    # rows only feed output rows that are sliced away below.
    grid = (pl.cdiv(B, tile_b),)

    def _run(single_buffer_weights):
        if single_buffer_weights:
            # constant blocks: one buffer each (halves resident VMEM; the DMA
            # is skipped after step 0 since the block index never changes).
            def res_spec(a):
                return pl.BlockSpec(a.shape, lambda i: (0, 0),
                                    pipeline_mode=pl.Buffered(1))
        else:
            def res_spec(a):
                return pl.BlockSpec(a.shape, lambda i: (0, 0))

        in_specs = [pl.BlockSpec((tile_b, K), lambda i: (i, 0))] + \
                   [res_spec(a) for a in weights]
        out_specs = pl.BlockSpec((tile_b, out_pad), lambda i: (i, 0))
        return pl.pallas_call(
            classifier_kernel,
            out_shape=jax.ShapeDtypeStruct((B, out_pad), jnp.bfloat16),
            grid=grid,
            in_specs=in_specs,
            out_specs=out_specs,
            compiler_params=pltpu.CompilerParams(
                dimension_semantics=("parallel",),
                vmem_limit_bytes=vmem_limit),
        )(x_flat, *weights)

    try:
        out = _run(single_buffer_weights=True)
    except Exception:
        # pl.Buffered(1) unsupported on this jax version -> default 2-deep
        # pipelining (only costs duplicated resident weight buffers).
        out = _run(single_buffer_weights=False)

    return out[:, :meta["num_classes"]].astype(jnp.float32)


# ---------------------------------------------------------------------------
# Pure-JAX f32 reference (mirrors the PyTorch forward)
# ---------------------------------------------------------------------------
def reference_forward(x, p):
    wd2 = jax.nn.softmax(p["weight_d2"], axis=0)
    red2 = jnp.squeeze(x @ wd2, -1)                       # (B, L, d1)
    wd1 = jax.nn.softmax(p["weight_d1"], axis=0)
    red = jnp.squeeze(red2 @ wd1, -1)                     # (B, L)
    mag = jnp.abs(jnp.fft.fft(red, axis=1)).astype(jnp.float32)
    h = mag @ p["wf"].T + p["bf"]
    h = jnp.maximum(h @ p["w1"].T + p["b1"], 0.0)
    h = jnp.maximum(h @ p["w2"].T + p["b2"], 0.0)
    return h @ p["w3"].T + p["b3"]


if __name__ == "__main__":
    B, L, d1, d2 = 2, 8, 4, 4
    hidden_dim, num_classes = 32, 5

    key = jax.random.PRNGKey(0)
    kx, kp = jax.random.split(key)
    x = jax.random.normal(kx, (B, L, d1, d2), jnp.float32)
    params = init_params(kp, d1, d2, L, num_classes, hidden_dim)

    prepared = prepare_classifier(params, L, d1, d2)      # one-time folding
    out = jax.block_until_ready(classifier_forward(x, prepared))
    ref = reference_forward(x, params)

    assert out.shape == (B, num_classes)
    # bf16 MXU chain + bf16 output slab vs f32 reference -> 3e-2 tolerance.
    err = float(np.max(np.abs(np.asarray(out) - np.asarray(ref))))
    assert np.allclose(np.asarray(out), np.asarray(ref), rtol=3e-2, atol=3e-2), (
        f"mismatch: max abs diff {err}")

    print("KERNEL_OK")
</pallas_src>

<mosaic_0001>
module attributes {stable_mosaic.version = 11 : i64} {
  func.func @classifier_kernel(%arg0: i32, %arg1: memref<2x128xf32, #tpu.memory_space<vmem>>, %arg2: memref<128x256xbf16, #tpu.memory_space<vmem>>, %arg3: memref<128x32xbf16, #tpu.memory_space<vmem>>, %arg4: memref<1x32xf32, #tpu.memory_space<vmem>>, %arg5: memref<32x16xbf16, #tpu.memory_space<vmem>>, %arg6: memref<1x16xf32, #tpu.memory_space<vmem>>, %arg7: memref<16x8xbf16, #tpu.memory_space<vmem>>, %arg8: memref<1x8xf32, #tpu.memory_space<vmem>>, %arg9: memref<8x128xbf16, #tpu.memory_space<vmem>>, %arg10: memref<1x128xf32, #tpu.memory_space<vmem>>, %arg11: memref<2x128xbf16, #tpu.memory_space<vmem>>) attributes {dimension_semantics = [#tpu.dimension_semantics<parallel>], iteration_bounds = array<i64: 1>, scalar_prefetch = 0 : i64, scratch_operands = 0 : i64, tpu.core_type = #tpu.core_type<tc>, window_params = [{transform_indices = @transform_0, window_bounds = array<i64: 2, 128>}, {pipeline_mode = #tpu.pipeline_mode<synchronous>, transform_indices = @transform_1, window_bounds = array<i64: 128, 256>}, {pipeline_mode = #tpu.pipeline_mode<synchronous>, transform_indices = @transform_2, window_bounds = array<i64: 128, 32>}, {pipeline_mode = #tpu.pipeline_mode<synchronous>, transform_indices = @transform_3, window_bounds = array<i64: 1, 32>}, {pipeline_mode = #tpu.pipeline_mode<synchronous>, transform_indices = @transform_4, window_bounds = array<i64: 32, 16>}, {pipeline_mode = #tpu.pipeline_mode<synchronous>, transform_indices = @transform_5, window_bounds = array<i64: 1, 16>}, {pipeline_mode = #tpu.pipeline_mode<synchronous>, transform_indices = @transform_6, window_bounds = array<i64: 16, 8>}, {pipeline_mode = #tpu.pipeline_mode<synchronous>, transform_indices = @transform_7, window_bounds = array<i64: 1, 8>}, {pipeline_mode = #tpu.pipeline_mode<synchronous>, transform_indices = @transform_8, window_bounds = array<i64: 8, 128>}, {pipeline_mode = #tpu.pipeline_mode<synchronous>, transform_indices = @transform_9, window_bounds = array<i64: 1, 128>}, {transform_indices = @transform_10, window_bounds = array<i64: 2, 128>}]} {
    %c0 = arith.constant 0 : index
    %c0_0 = arith.constant 0 : index
    %0 = vector.load %arg1[%c0, %c0_0] : memref<2x128xf32, #tpu.memory_space<vmem>>, vector<2x128xf32>
    %1 = arith.truncf %0 : vector<2x128xf32> to vector<2x128xbf16>
    %c0_1 = arith.constant 0 : index
    %c0_2 = arith.constant 0 : index
    %2 = vector.load %arg2[%c0_1, %c0_2] : memref<128x256xbf16, #tpu.memory_space<vmem>>, vector<128x256xbf16>
    %cst = arith.constant dense<0.000000e+00> : vector<2x256xf32>
    %3 = tpu.matmul %1, %2, %cst {dimension_numbers = #tpu.dot_dimension_numbers<[1], [0], [0], [1], [0, 0, 1, 1], [], []>} : vector<2x128xbf16>, vector<128x256xbf16>, vector<2x256xf32> -> vector<2x256xf32>
    %4 = vector.extract_strided_slice %3 {offsets = [0, 0], sizes = [2, 128], strides = [1, 1]} : vector<2x256xf32> to vector<2x128xf32>
    %5 = vector.extract_strided_slice %3 {offsets = [0, 128], sizes = [2, 128], strides = [1, 1]} : vector<2x256xf32> to vector<2x128xf32>
    %6 = arith.mulf %4, %4 : vector<2x128xf32>
    %7 = arith.mulf %5, %5 : vector<2x128xf32>
    %8 = arith.addf %6, %7 : vector<2x128xf32>
    %9 = math.sqrt %8 : vector<2x128xf32>
    %10 = arith.truncf %9 : vector<2x128xf32> to vector<2x128xbf16>
    %c0_3 = arith.constant 0 : index
    %c0_4 = arith.constant 0 : index
    %11 = vector.load %arg3[%c0_3, %c0_4] : memref<128x32xbf16, #tpu.memory_space<vmem>>, vector<128x32xbf16>
    %cst_5 = arith.constant dense<0.000000e+00> : vector<2x32xf32>
    %12 = tpu.matmul %10, %11, %cst_5 {dimension_numbers = #tpu.dot_dimension_numbers<[1], [0], [0], [1], [0, 0, 1, 1], [], []>} : vector<2x128xbf16>, vector<128x32xbf16>, vector<2x32xf32> -> vector<2x32xf32>
    %c0_6 = arith.constant 0 : index
    %c0_7 = arith.constant 0 : index
    %13 = vector.load %arg4[%c0_6, %c0_7] : memref<1x32xf32, #tpu.memory_space<vmem>>, vector<1x32xf32>
    %14 = vector.broadcast %13 : vector<1x32xf32> to vector<2x32xf32>
    %15 = arith.addf %12, %14 : vector<2x32xf32>
    %16 = arith.truncf %15 : vector<2x32xf32> to vector<2x32xbf16>
    %c0_8 = arith.constant 0 : index
    %c0_9 = arith.constant 0 : index
    %17 = vector.load %arg5[%c0_8, %c0_9] : memref<32x16xbf16, #tpu.memory_space<vmem>>, vector<32x16xbf16>
    %cst_10 = arith.constant dense<0.000000e+00> : vector<2x16xf32>
    %18 = tpu.matmul %16, %17, %cst_10 {dimension_numbers = #tpu.dot_dimension_numbers<[1], [0], [0], [1], [0, 0, 1, 1], [], []>} : vector<2x32xbf16>, vector<32x16xbf16>, vector<2x16xf32> -> vector<2x16xf32>
    %c0_11 = arith.constant 0 : index
    %c0_12 = arith.constant 0 : index
    %19 = vector.load %arg6[%c0_11, %c0_12] : memref<1x16xf32, #tpu.memory_space<vmem>>, vector<1x16xf32>
    %20 = vector.broadcast %19 : vector<1x16xf32> to vector<2x16xf32>
    %21 = arith.addf %18, %20 : vector<2x16xf32>
    %cst_13 = arith.constant 0.000000e+00 : f32
    %22 = vector.broadcast %cst_13 : f32 to vector<2x16xf32>
    %23 = arith.maximumf %21, %22 : vector<2x16xf32>
    %24 = arith.truncf %23 : vector<2x16xf32> to vector<2x16xbf16>
    %c0_14 = arith.constant 0 : index
    %c0_15 = arith.constant 0 : index
    %25 = vector.load %arg7[%c0_14, %c0_15] : memref<16x8xbf16, #tpu.memory_space<vmem>>, vector<16x8xbf16>
    %cst_16 = arith.constant dense<0.000000e+00> : vector<2x8xf32>
    %26 = tpu.matmul %24, %25, %cst_16 {dimension_numbers = #tpu.dot_dimension_numbers<[1], [0], [0], [1], [0, 0, 1, 1], [], []>} : vector<2x16xbf16>, vector<16x8xbf16>, vector<2x8xf32> -> vector<2x8xf32>
    %c0_17 = arith.constant 0 : index
    %c0_18 = arith.constant 0 : index
    %27 = vector.load %arg8[%c0_17, %c0_18] : memref<1x8xf32, #tpu.memory_space<vmem>>, vector<1x8xf32>
    %28 = vector.broadcast %27 : vector<1x8xf32> to vector<2x8xf32>
    %29 = arith.addf %26, %28 : vector<2x8xf32>
    %cst_19 = arith.constant 0.000000e+00 : f32
    %30 = vector.broadcast %cst_19 : f32 to vector<2x8xf32>
    %31 = arith.maximumf %29, %30 : vector<2x8xf32>
    %32 = arith.truncf %31 : vector<2x8xf32> to vector<2x8xbf16>
    %c0_20 = arith.constant 0 : index
    %c0_21 = arith.constant 0 : index
    %33 = vector.load %arg9[%c0_20, %c0_21] : memref<8x128xbf16, #tpu.memory_space<vmem>>, vector<8x128xbf16>
    %cst_22 = arith.constant dense<0.000000e+00> : vector<2x128xf32>
    %34 = tpu.matmul %32, %33, %cst_22 {dimension_numbers = #tpu.dot_dimension_numbers<[1], [0], [0], [1], [0, 0, 1, 1], [], []>} : vector<2x8xbf16>, vector<8x128xbf16>, vector<2x128xf32> -> vector<2x128xf32>
    %c0_23 = arith.constant 0 : index
    %c0_24 = arith.constant 0 : index
    %35 = vector.load %arg10[%c0_23, %c0_24] : memref<1x128xf32, #tpu.memory_space<vmem>>, vector<1x128xf32>
    %36 = vector.broadcast %35 : vector<1x128xf32> to vector<2x128xf32>
    %37 = arith.addf %34, %36 : vector<2x128xf32>
    %38 = arith.truncf %37 : vector<2x128xf32> to vector<2x128xbf16>
    %c0_25 = arith.constant 0 : index
    %c0_26 = arith.constant 0 : index
    %39 = vector.load %arg11[%c0_25, %c0_26] : memref<2x128xbf16, #tpu.memory_space<vmem>>, vector<2x128xbf16>
    tpu.vector_store %arg11[%c0_25, %c0_26], %38 {strides = array<i32>} : memref<2x128xbf16, #tpu.memory_space<vmem>>, vector<2x128xbf16>,
    return
  }
  func.func @transform_0(%arg0: i32) -> (i32, i32) {
    %c0_i32 = arith.constant 0 : i32
    %c0_i32_0 = arith.constant 0 : i32
    return %arg0, %c0_i32 : i32, i32
  }
  func.func @transform_1(%arg0: i32) -> (i32, i32) {
    %c0_i32 = arith.constant 0 : i32
    %c0_i32_0 = arith.constant 0 : i32
    %c0_i32_1 = arith.constant 0 : i32
    return %c0_i32, %c0_i32_0 : i32, i32
  }
  func.func @transform_2(%arg0: i32) -> (i32, i32) {
    %c0_i32 = arith.constant 0 : i32
    %c0_i32_0 = arith.constant 0 : i32
    %c0_i32_1 = arith.constant 0 : i32
    return %c0_i32, %c0_i32_0 : i32, i32
  }
  func.func @transform_3(%arg0: i32) -> (i32, i32) {
    %c0_i32 = arith.constant 0 : i32
    %c0_i32_0 = arith.constant 0 : i32
    %c0_i32_1 = arith.constant 0 : i32
    return %c0_i32, %c0_i32_0 : i32, i32
  }
  func.func @transform_4(%arg0: i32) -> (i32, i32) {
    %c0_i32 = arith.constant 0 : i32
    %c0_i32_0 = arith.constant 0 : i32
    %c0_i32_1 = arith.constant 0 : i32
    return %c0_i32, %c0_i32_0 : i32, i32
  }
  func.func @transform_5(%arg0: i32) -> (i32, i32) {
    %c0_i32 = arith.constant 0 : i32
    %c0_i32_0 = arith.constant 0 : i32
    %c0_i32_1 = arith.constant 0 : i32
    return %c0_i32, %c0_i32_0 : i32, i32
  }
  func.func @transform_6(%arg0: i32) -> (i32, i32) {
    %c0_i32 = arith.constant 0 : i32
    %c0_i32_0 = arith.constant 0 : i32
    %c0_i32_1 = arith.constant 0 : i32
    return %c0_i32, %c0_i32_0 : i32, i32
  }
  func.func @transform_7(%arg0: i32) -> (i32, i32) {
    %c0_i32 = arith.constant 0 : i32
    %c0_i32_0 = arith.constant 0 : i32
    %c0_i32_1 = arith.constant 0 : i32
    return %c0_i32, %c0_i32_0 : i32, i32
  }
  func.func @transform_8(%arg0: i32) -> (i32, i32) {
    %c0_i32 = arith.constant 0 : i32
    %c0_i32_0 = arith.constant 0 : i32
    %c0_i32_1 = arith.constant 0 : i32
    return %c0_i32, %c0_i32_0 : i32, i32
  }
  func.func @transform_9(%arg0: i32) -> (i32, i32) {
    %c0_i32 = arith.constant 0 : i32
    %c0_i32_0 = arith.constant 0 : i32
    %c0_i32_1 = arith.constant 0 : i32
    return %c0_i32, %c0_i32_0 : i32, i32
  }
  func.func @transform_10(%arg0: i32) -> (i32, i32) {
    %c0_i32 = arith.constant 0 : i32
    %c0_i32_0 = arith.constant 0 : i32
    return %arg0, %c0_i32 : i32, i32
  }
}

module attributes {stable_mosaic.version = 11 : i64} {
  func.func @classifier_kernel(%arg0: i32, %arg1: memref<2x128xf32, #tpu.memory_space<vmem>>, %arg2: memref<128x256xbf16, #tpu.memory_space<vmem>>, %arg3: memref<128x32xbf16, #tpu.memory_space<vmem>>, %arg4: memref<1x32xf32, #tpu.memory_space<vmem>>, %arg5: memref<32x16xbf16, #tpu.memory_space<vmem>>, %arg6: memref<1x16xf32, #tpu.memory_space<vmem>>, %arg7: memref<16x8xbf16, #tpu.memory_space<vmem>>, %arg8: memref<1x8xf32, #tpu.memory_space<vmem>>, %arg9: memref<8x128xbf16, #tpu.memory_space<vmem>>, %arg10: memref<1x128xf32, #tpu.memory_space<vmem>>, %arg11: memref<2x128xbf16, #tpu.memory_space<vmem>>) attributes {dimension_semantics = [#tpu.dimension_semantics<parallel>], iteration_bounds = array<i64: 1>, scalar_prefetch = 0 : i64, scratch_operands = 0 : i64, tpu.core_type = #tpu.core_type<tc>, window_params = [{transform_indices = @transform_0, window_bounds = array<i64: 2, 128>}, {pipeline_mode = #tpu.pipeline_mode<synchronous>, transform_indices = @transform_1, window_bounds = array<i64: 128, 256>}, {pipeline_mode = #tpu.pipeline_mode<synchronous>, transform_indices = @transform_2, window_bounds = array<i64: 128, 32>}, {pipeline_mode = #tpu.pipeline_mode<synchronous>, transform_indices = @transform_3, window_bounds = array<i64: 1, 32>}, {pipeline_mode = #tpu.pipeline_mode<synchronous>, transform_indices = @transform_4, window_bounds = array<i64: 32, 16>}, {pipeline_mode = #tpu.pipeline_mode<synchronous>, transform_indices = @transform_5, window_bounds = array<i64: 1, 16>}, {pipeline_mode = #tpu.pipeline_mode<synchronous>, transform_indices = @transform_6, window_bounds = array<i64: 16, 8>}, {pipeline_mode = #tpu.pipeline_mode<synchronous>, transform_indices = @transform_7, window_bounds = array<i64: 1, 8>}, {pipeline_mode = #tpu.pipeline_mode<synchronous>, transform_indices = @transform_8, window_bounds = array<i64: 8, 128>}, {pipeline_mode = #tpu.pipeline_mode<synchronous>, transform_indices = @transform_9, window_bounds = array<i64: 1, 128>}, {transform_indices = @transform_10, window_bounds = array<i64: 2, 128>}]} {
    %c0 = arith.constant 0 : index
    %c0_0 = arith.constant 0 : index
    %0 = vector.load %arg1[%c0, %c0_0] : memref<2x128xf32, #tpu.memory_space<vmem>>, vector<2x128xf32>
    %1 = arith.truncf %0 : vector<2x128xf32> to vector<2x128xbf16>
    %c0_1 = arith.constant 0 : index
    %c0_2 = arith.constant 0 : index
    %2 = vector.load %arg2[%c0_1, %c0_2] : memref<128x256xbf16, #tpu.memory_space<vmem>>, vector<128x256xbf16>
    %cst = arith.constant dense<0.000000e+00> : vector<2x256xf32>
    %3 = tpu.matmul %1, %2, %cst {dimension_numbers = #tpu.dot_dimension_numbers<[1], [0], [0], [1], [0, 0, 1, 1], [], []>} : vector<2x128xbf16>, vector<128x256xbf16>, vector<2x256xf32> -> vector<2x256xf32>
    %4 = vector.extract_strided_slice %3 {offsets = [0, 0], sizes = [2, 128], strides = [1, 1]} : vector<2x256xf32> to vector<2x128xf32>
    %5 = vector.extract_strided_slice %3 {offsets = [0, 128], sizes = [2, 128], strides = [1, 1]} : vector<2x256xf32> to vector<2x128xf32>
    %6 = arith.mulf %4, %4 : vector<2x128xf32>
    %7 = arith.mulf %5, %5 : vector<2x128xf32>
    %8 = arith.addf %6, %7 : vector<2x128xf32>
    %9 = math.sqrt %8 : vector<2x128xf32>
    %10 = arith.truncf %9 : vector<2x128xf32> to vector<2x128xbf16>
    %c0_3 = arith.constant 0 : index
    %c0_4 = arith.constant 0 : index
    %11 = vector.load %arg3[%c0_3, %c0_4] : memref<128x32xbf16, #tpu.memory_space<vmem>>, vector<128x32xbf16>
    %cst_5 = arith.constant dense<0.000000e+00> : vector<2x32xf32>
    %12 = tpu.matmul %10, %11, %cst_5 {dimension_numbers = #tpu.dot_dimension_numbers<[1], [0], [0], [1], [0, 0, 1, 1], [], []>} : vector<2x128xbf16>, vector<128x32xbf16>, vector<2x32xf32> -> vector<2x32xf32>
    %c0_6 = arith.constant 0 : index
    %c0_7 = arith.constant 0 : index
    %13 = vector.load %arg4[%c0_6, %c0_7] : memref<1x32xf32, #tpu.memory_space<vmem>>, vector<1x32xf32>
    %14 = vector.broadcast %13 : vector<1x32xf32> to vector<2x32xf32>
    %15 = arith.addf %12, %14 : vector<2x32xf32>
    %16 = arith.truncf %15 : vector<2x32xf32> to vector<2x32xbf16>
    %c0_8 = arith.constant 0 : index
    %c0_9 = arith.constant 0 : index
    %17 = vector.load %arg5[%c0_8, %c0_9] : memref<32x16xbf16, #tpu.memory_space<vmem>>, vector<32x16xbf16>
    %cst_10 = arith.constant dense<0.000000e+00> : vector<2x16xf32>
    %18 = tpu.matmul %16, %17, %cst_10 {dimension_numbers = #tpu.dot_dimension_numbers<[1], [0], [0], [1], [0, 0, 1, 1], [], []>} : vector<2x32xbf16>, vector<32x16xbf16>, vector<2x16xf32> -> vector<2x16xf32>
    %c0_11 = arith.constant 0 : index
    %c0_12 = arith.constant 0 : index
    %19 = vector.load %arg6[%c0_11, %c0_12] : memref<1x16xf32, #tpu.memory_space<vmem>>, vector<1x16xf32>
    %20 = vector.broadcast %19 : vector<1x16xf32> to vector<2x16xf32>
    %21 = arith.addf %18, %20 : vector<2x16xf32>
    %cst_13 = arith.constant 0.000000e+00 : f32
    %22 = vector.broadcast %cst_13 : f32 to vector<2x16xf32>
    %23 = arith.maximumf %21, %22 : vector<2x16xf32>
    %24 = arith.truncf %23 : vector<2x16xf32> to vector<2x16xbf16>
    %c0_14 = arith.constant 0 : index
    %c0_15 = arith.constant 0 : index
    %25 = vector.load %arg7[%c0_14, %c0_15] : memref<16x8xbf16, #tpu.memory_space<vmem>>, vector<16x8xbf16>
    %cst_16 = arith.constant dense<0.000000e+00> : vector<2x8xf32>
    %26 = tpu.matmul %24, %25, %cst_16 {dimension_numbers = #tpu.dot_dimension_numbers<[1], [0], [0], [1], [0, 0, 1, 1], [], []>} : vector<2x16xbf16>, vector<16x8xbf16>, vector<2x8xf32> -> vector<2x8xf32>
    %c0_17 = arith.constant 0 : index
    %c0_18 = arith.constant 0 : index
    %27 = vector.load %arg8[%c0_17, %c0_18] : memref<1x8xf32, #tpu.memory_space<vmem>>, vector<1x8xf32>
    %28 = vector.broadcast %27 : vector<1x8xf32> to vector<2x8xf32>
    %29 = arith.addf %26, %28 : vector<2x8xf32>
    %cst_19 = arith.constant 0.000000e+00 : f32
    %30 = vector.broadcast %cst_19 : f32 to vector<2x8xf32>
    %31 = arith.maximumf %29, %30 : vector<2x8xf32>
    %32 = arith.truncf %31 : vector<2x8xf32> to vector<2x8xbf16>
    %c0_20 = arith.constant 0 : index
    %c0_21 = arith.constant 0 : index
    %33 = vector.load %arg9[%c0_20, %c0_21] : memref<8x128xbf16, #tpu.memory_space<vmem>>, vector<8x128xbf16>
    %cst_22 = arith.constant dense<0.000000e+00> : vector<2x128xf32>
    %34 = tpu.matmul %32, %33, %cst_22 {dimension_numbers = #tpu.dot_dimension_numbers<[1], [0], [0], [1], [0, 0, 1, 1], [], []>} : vector<2x8xbf16>, vector<8x128xbf16>, vector<2x128xf32> -> vector<2x128xf32>
    %c0_23 = arith.constant 0 : index
    %c0_24 = arith.constant 0 : index
    %35 = vector.load %arg10[%c0_23, %c0_24] : memref<1x128xf32, #tpu.memory_space<vmem>>, vector<1x128xf32>
    %36 = vector.broadcast %35 : vector<1x128xf32> to vector<2x128xf32>
    %37 = arith.addf %34, %36 : vector<2x128xf32>
    %38 = arith.truncf %37 : vector<2x128xf32> to vector<2x128xbf16>
    %c0_25 = arith.constant 0 : index
    %c0_26 = arith.constant 0 : index
    %39 = vector.load %arg11[%c0_25, %c0_26] : memref<2x128xbf16, #tpu.memory_space<vmem>>, vector<2x128xbf16>
    tpu.vector_store %arg11[%c0_25, %c0_26], %38 {strides = array<i32>} : memref<2x128xbf16, #tpu.memory_space<vmem>>, vector<2x128xbf16>,
    return
  }
  func.func @transform_0(%arg0: i32) -> (i32, i32) {
    %c0_i32 = arith.constant 0 : i32
    %c0_i32_0 = arith.constant 0 : i32
    return %arg0, %c0_i32 : i32, i32
  }
  func.func @transform_1(%arg0: i32) -> (i32, i32) {
    %c0_i32 = arith.constant 0 : i32
    %c0_i32_0 = arith.constant 0 : i32
    %c0_i32_1 = arith.constant 0 : i32
    return %c0_i32, %c0_i32_0 : i32, i32
  }
  func.func @transform_2(%arg0: i32) -> (i32, i32) {
    %c0_i32 = arith.constant 0 : i32
    %c0_i32_0 = arith.constant 0 : i32
    %c0_i32_1 = arith.constant 0 : i32
    return %c0_i32, %c0_i32_0 : i32, i32
  }
  func.func @transform_3(%arg0: i32) -> (i32, i32) {
    %c0_i32 = arith.constant 0 : i32
    %c0_i32_0 = arith.constant 0 : i32
    %c0_i32_1 = arith.constant 0 : i32
    return %c0_i32, %c0_i32_0 : i32, i32
  }
  func.func @transform_4(%arg0: i32) -> (i32, i32) {
    %c0_i32 = arith.constant 0 : i32
    %c0_i32_0 = arith.constant 0 : i32
    %c0_i32_1 = arith.constant 0 : i32
    return %c0_i32, %c0_i32_0 : i32, i32
  }
  func.func @transform_5(%arg0: i32) -> (i32, i32) {
    %c0_i32 = arith.constant 0 : i32
    %c0_i32_0 = arith.constant 0 : i32
    %c0_i32_1 = arith.constant 0 : i32
    return %c0_i32, %c0_i32_0 : i32, i32
  }
  func.func @transform_6(%arg0: i32) -> (i32, i32) {
    %c0_i32 = arith.constant 0 : i32
    %c0_i32_0 = arith.constant 0 : i32
    %c0_i32_1 = arith.constant 0 : i32
    return %c0_i32, %c0_i32_0 : i32, i32
  }
  func.func @transform_7(%arg0: i32) -> (i32, i32) {
    %c0_i32 = arith.constant 0 : i32
    %c0_i32_0 = arith.constant 0 : i32
    %c0_i32_1 = arith.constant 0 : i32
    return %c0_i32, %c0_i32_0 : i32, i32
  }
  func.func @transform_8(%arg0: i32) -> (i32, i32) {
    %c0_i32 = arith.constant 0 : i32
    %c0_i32_0 = arith.constant 0 : i32
    %c0_i32_1 = arith.constant 0 : i32
    return %c0_i32, %c0_i32_0 : i32, i32
  }
  func.func @transform_9(%arg0: i32) -> (i32, i32) {
    %c0_i32 = arith.constant 0 : i32
    %c0_i32_0 = arith.constant 0 : i32
    %c0_i32_1 = arith.constant 0 : i32
    return %c0_i32, %c0_i32_0 : i32, i32
  }
  func.func @transform_10(%arg0: i32) -> (i32, i32) {
    %c0_i32 = arith.constant 0 : i32
    %c0_i32_0 = arith.constant 0 : i32
    return %arg0, %c0_i32 : i32, i32
  }
}

</mosaic_0001>

<bundles_post_ra>
// kernel: tpu_custom_call.1
= control target key start
LH: loop header
LB: loop body
LE: loop exit
PB: predicated region body
PF: predicated region fallthrough
CT: control target
= control target key end

     0   :  { %15 = vsyncpa [#allocation3], 0  ;;  %s706_s0 = inlined_call_operand.vmem [shape: f32[2,128], index: 0, kind: input, shape index: {}]   ;;  %s707_s1 = inlined_call_operand.hbm [shape: bf16[128,256], index: 1, kind: input, shape index: {}]   ;;  %s708_s2 = inlined_call_operand.vmem [shape: bf16[128,32], index: 2, kind: input, shape index: {}]   ;;  %s709_s3 = inlined_call_operand.vmem [shape: f32[1,32], index: 3, kind: input, shape index: {}]   ;;  %s710_s4 = inlined_call_operand.vmem [shape: bf16[32,16], index: 4, kind: input, shape index: {}]   ;;  %s711_s5 = inlined_call_operand.vmem [shape: f32[1,16], index: 5, kind: input, shape index: {}]   ;;  %s712_s6 = inlined_call_operand.vmem [shape: bf16[16,8], index: 6, kind: input, shape index: {}]   ;;  %s713_s7 = inlined_call_operand.vmem [shape: f32[1,8], index: 7, kind: input, shape index: {}]   ;;  %s714_s8 = inlined_call_operand.vmem [shape: bf16[8,128], index: 8, kind: input, shape index: {}]   ;;  %s715_s9 = inlined_call_operand.vmem [shape: f32[1,128], index: 9, kind: input, shape index: {}]   ;;  %s716_s10 = inlined_call_operand.hbm [shape: bf16[2,128], index: 10, kind: output, shape index: {}]  }
   0x1   :  { %16 = vsyncpa [#allocation4], 0  ;;  %s23_s15 = sshll.u32 %s707_s1, 4  ;;  %s590_s16 = smov [#allocation2]   ;;  %s24_s15 = int_to_ptr.hbm [resolvable:$true] %s23_s15 }
   0x2   :  { %s25_s17 = sshll.u32 %s590_s16, 4  ;;  %s591_s18 = smov 128   ;;  %s26_s17 = int_to_ptr.vmem [resolvable:$true] %s25_s17 }
   0x3   :  { %s592_s19 = smov 8  }
   0x4   :  { %31 = dma.hbm_to_vmem [thread:$0]  %s24_s15, 2048, %s26_s17, [#allocation3], %s591_s18, %s591_s18, %s592_s19  }
   0x5   :  { %586 = dma.done.wait [#allocation3], 2048  }
   0x6   :  { %587 = vsyncadd [#allocation3], 4294965248  ;;  %v448_v0 = vld [vmem:[#allocation2 + $0x70] sm:$0xf]  ;;  %v516_v1 = vld [vmem:[#allocation2 + $0x74] sm:$0xf0] }
   0x7   :  { %v515_v2 = vld [vmem:[#allocation2 + $0x74] sm:$0xf]  ;;  %v449_v3 = vor.u32 %v516_v1, %v448_v0  ;;  %v450_v4 = vld [vmem:[#allocation2 + $0x78] sm:$0xf0]  ;;  %v440_v5 = vld [vmem:[#allocation2 + $0x60] sm:$0xf] }
   0x8   :  { %v514_v6 = vld [vmem:[#allocation2 + $0x64] sm:$0xf0]  ;;  %v453_v7 = vor.u32 %v515_v2, %v450_v4  ;;  %v513_v8 = vld [vmem:[#allocation2 + $0x64] sm:$0xf]  ;;  %v442_v9 = vld [vmem:[#allocation2 + $0x68] sm:$0xf0] }
   0x9   :  { %151 = vmatpush.bf16.msra.mxu0 %v449_v3  ;;  %v441_v10 = vor.u32 %v514_v6, %v440_v5  ;;  %v445_v11 = vor.u32 %v513_v8, %v442_v9  ;;  %v432_v12 = vld [vmem:[#allocation2 + $0x50] sm:$0xf]  ;;  %v512_v13 = vld [vmem:[#allocation2 + $0x54] sm:$0xf0]  ;;  %v511_v14 = vld [vmem:[#allocation2 + $0x54] sm:$0xf] }
   0xa   :  { %164 = vmatpush.bf16.msra.mxu1 %v453_v7  ;;  %v434_v15 = vld [vmem:[#allocation2 + $0x58] sm:$0xf0]  ;;  %v433_v16 = vor.u32 %v512_v13, %v432_v12  ;;  %v424_v18 = vld [vmem:[#allocation2 + $0x40] sm:$0xf]  ;;  %v510_v19 = vld [vmem:[#allocation2 + $0x44] sm:$0xf0] }
   0xb   :  { %v437_v17 = vor.u32 %v511_v14, %v434_v15  ;;  %v509_v20 = vld [vmem:[#allocation2 + $0x44] sm:$0xf]  ;;  %v426_v21 = vld [vmem:[#allocation2 + $0x48] sm:$0xf0]  ;;  %v416_v22 = vld [vmem:[#allocation2 + $0x30] sm:$0xf]  ;;  %v425_v23 = vor.u32 %v510_v19, %v424_v18 }
   0xc   :  { %v524_v24 = vld [vmem:[%s708_s2 + $0x38] sm:$0xff]  ;;  %v429_v25 = vor.u32 %v509_v20, %v426_v21  ;;  %v507_v27 = vld [vmem:[#allocation2 + $0x34] sm:$0xf]  ;;  %v408_v31 = vld [vmem:[#allocation2 + $0x20] sm:$0xf]  ;;  %vm295_vm2 = vcmask 261120  }
   0xd   :  { %152 = vmatpush.bf16.msra.mxu0 %v441_v10  ;;  %v508_v26 = vld [vmem:[#allocation2 + $0x34] sm:$0xf0]  ;;  %v418_v28 = vld [vmem:[#allocation2 + $0x38] sm:$0xf0]  ;;  %261 = vmatpush.bf16.msra.mxu2 %v524_v24  ;;  %v506_v32 = vld [vmem:[#allocation2 + $0x24] sm:$0xf0] }
   0xe   :  { %165 = vmatpush.bf16.msra.mxu1 %v445_v11  ;;  %v417_v29 = vor.u32 %v508_v26, %v416_v22  ;;  %v421_v30 = vor.u32 %v507_v27, %v418_v28  ;;  %v505_v33 = vld [vmem:[#allocation2 + $0x24] sm:$0xf]  ;;  %v410_v34 = vld [vmem:[#allocation2 + $0x28] sm:$0xf0]  ;;  %v409_v35 = vor.u32 %v506_v32, %v408_v31  ;;  %v400_v37 = vld [vmem:[#allocation2 + $0x10] sm:$0xf] }
   0xf   :  { %v413_v36 = vor.u32 %v505_v33, %v410_v34  ;;  %v504_v38 = vld [vmem:[#allocation2 + $0x14] sm:$0xf0]  ;;  %v503_v39 = vld [vmem:[#allocation2 + $0x14] sm:$0xf]  ;;  %v402_v40 = vld [vmem:[#allocation2 + $0x18] sm:$0xf0] }
  0x10   :  { %v401_v41 = vor.u32 %v504_v38, %v400_v37  ;;  %v405_v42 = vor.u32 %v503_v39, %v402_v40  ;;  %v392_v43 = vld [vmem:[#allocation2] sm:$0xf]  ;;  %v502_v44 = vld [vmem:[#allocation2 + $0x4] sm:$0xf0]  ;;  %v501_v45 = vld [vmem:[#allocation2 + $0x4] sm:$0xf] }
  0x11   :  { %153 = vmatpush.bf16.msra.mxu0 %v433_v16  ;;  %v394_v46 = vld [vmem:[#allocation2 + $0x8] sm:$0xf0]  ;;  %v393_v47 = vor.u32 %v502_v44, %v392_v43  ;;  %v53_v48 = vld [vmem:[%s706_s0] sm:$0x3]  ;;  %v523_v51 = vld [vmem:[%s708_s2 + $0x30] sm:$0xff]  ;;  %vm354_vm3 = vcmask 1043456  }
  0x12   :  { %166 = vmatpush.bf16.msra.mxu1 %v437_v17  ;;  %v397_v49 = vor.u32 %v501_v45, %v394_v46  ;;  %v54_v50 = vpack.c.bf16 %v53_v48, %v53_v48  ;;  %262 = vmatpush.bf16.msra.mxu2 %v523_v51  ;;  %v522_v52 = vld [vmem:[%s708_s2 + $0x28] sm:$0xff]  ;;  %v521_v53 = vld [vmem:[%s708_s2 + $0x20] sm:$0xff]  ;;  %v520_v54 = vld [vmem:[%s708_s2 + $0x18] sm:$0xff]  ;;  %vm326_vm4 = vcmask 130048   ;;  %vm350_vm5 = vcmask 64512   ;;  %s593_s25 = smov [#allocation5]  }
  0x13   :  { %v519_v55 = vld [vmem:[%s708_s2 + $0x10] sm:$0xff]  ;;  %v518_v56 = vld [vmem:[%s708_s2 + $0x8] sm:$0xff]  ;;  %v517_v57 = vld [vmem:[%s708_s2] sm:$0xff]  ;;  %s378_s26 = sshll.u32 %s593_s25, 4  ;;  %s380_s0 = sshll.u32 %s716_s10, 4  ;;  %s379_s26 = int_to_ptr.vmem [resolvable:$true] %s378_s26  ;;  %s381_s0 = int_to_ptr.hbm [resolvable:$true] %s380_s0 }
  0x14   :  { %v526_v58 = vld [vmem:[%s710_s4 + $0x8] sm:$0xff]  ;;  %v525_v13 = vld [vmem:[%s710_s4] sm:$0xff] }
  0x15   :  { %154 = vmatpush.bf16.msra.mxu0 %v425_v23  ;;  %305 = vmatpush.bf16.msra.mxu3 %v526_v58  ;;  %v527_v14 = vld [vmem:[%s712_s6] sm:$0xff] }
  0x16   :  { %167 = vmatpush.bf16.msra.mxu1 %v429_v25  ;;  %263 = vmatpush.bf16.msra.mxu2 %v522_v52  ;;  %v532_v15 = vld [vmem:[%s709_s3] ss:$0 sm:$0xff] }
  0x17   :  { %v345_v20 = vld [vmem:[%s714_s8] sm:$0xf] }
  0x18   :  { %v356_v21 = vsel %vm354_vm3, %v345_v20, 0  ;;  %v533_v22 = vld [vmem:[%s711_s5] ss:$0 sm:$0xff] }
  0x19   :  { %155 = vmatpush.bf16.msra.mxu0 %v417_v29  ;;  %306 = vmatpush.bf16.msra.mxu3 %v525_v13  ;;  %v534_v28 = vld [vmem:[%s713_s7] ss:$0 sm:$0xff] }
  0x1a   :  { %168 = vmatpush.bf16.msra.mxu1 %v421_v30  ;;  %264 = vmatpush.bf16.msra.mxu2 %v521_v53  ;;  %v535_v34 = vld [vmem:[%s715_s9] ss:$0 sm:$0xff] }
  0x1d   :  { %156 = vmatpush.bf16.msra.mxu0 %v409_v35  ;;  %337 = vmatpush.bf16.msrb.mxu3 %v527_v14 }
  0x1e   :  { %169 = vmatpush.bf16.msra.mxu1 %v413_v36  ;;  %265 = vmatpush.bf16.msra.mxu2 %v520_v54 }
  0x21   :  { %157 = vmatpush.bf16.msra.mxu0 %v401_v41 }
  0x22   :  { %170 = vmatpush.bf16.msra.mxu1 %v405_v42  ;;  %266 = vmatpush.bf16.msra.mxu2 %v519_v55 }
  0x25   :  { %158 = vmatpush.bf16.msra.mxu0 %v393_v47 }
  0x26   :  { %171 = vmatpush.bf16.msra.mxu1 %v397_v49  ;;  %267 = vmatpush.bf16.msra.mxu2 %v518_v56 }
  0x28   :  { %159 = vmatmul.bf16.vlgmr.msra.gmra.mxu0 %v54_v50 }
  0x29   :  { %172 = vmatmul.bf16.vlgmr.msra.gmra.mxu1 %v54_v50 }
  0x2a   :  { %268 = vmatpush.bf16.msra.mxu2 %v517_v57 }
  0xa5   :  { %v160_v59 = vpop.f32.mrf.mxu0 }
  0xa6   :  { %v177_v60 = vmul.f32 %v160_v59, %v160_v59  ;;  %v173_v61 = vpop.f32.mrf.mxu1 }
  0xa7   :  { %v178_v62 = vmul.f32 %v173_v61, %v173_v61 }
  0xa9   :  { %v179_v63 = vadd.f32 %v178_v62, %v177_v60 }
  0xab   :  { %536 = vrsqrt.f32 %v179_v63  ;;  %vm187_vm0 = vcmp.eq.f32.partialorder %v179_v63, inf  ;;  %v190_v9 = vand.u32 2147483648, %v179_v63  ;;  %vm189_vm1 = vcmp.eq.f32.partialorder %v179_v63, 0.0 }
  0xad   :  { %v162_v0 = vpop.f32.mrf.mxu0 }
  0xae   :  { %v175_v1 = vpop.f32.mrf.mxu1 }
  0xb1   :  { %v537_v2 = vpop.eup %536 }
  0xb2   :  { %v181_v3 = vmul.f32 %v537_v2, %v179_v63 }
  0xb4   :  { %v182_v4 = vmul.f32 %v537_v2, %v181_v3 }
  0xb6   :  { %v183_v5 = vmul.f32 0.5, %v182_v4 }
  0xb8   :  { %v184_v6 = vsub.f32 1.5, %v183_v5 }
  0xba   :  { %v185_v7 = vmul.f32 %v537_v2, %v184_v6 }
  0xbc   :  { %v186_v8 = vmul.f32 %v185_v7, %v179_v63 }
  0xbe   :  { %v188_v10 = vsel %vm187_vm0, %v179_v63, %v186_v8 }
  0xbf   :  { %v191_v11 = vsel %vm189_vm1, %v190_v9, %v188_v10 }
  0xc0   :  { %v192_v12 = vpack.c.bf16 %v191_v11, %v191_v11 }
  0xc2   :  { %269 = vmatmul.bf16.vlgmr.msra.gmra.mxu2 %v192_v12 }
 0x145   :  { %v270_v16 = vpop.f32.mrf.mxu2 }
 0x146   :  { %v271_v17 = vadd.f32 %v532_v15, %v270_v16 }
 0x148   :  { %v274_v18 = vpack.c.bf16 %v271_v17, %v271_v17 }
 0x14a   :  { %494 = vmatmul.msk.bf16.vlgmr.msra.gmra.mxu3 %vm295_vm2, %v274_v18 }
 0x14b   :  { %365 = vmatpush.bf16.msra.mxu3 %v356_v21 }
 0x14d   :  { %v272_v19 = vpop.f32.mrf.mxu2 }
 0x1cd   :  { %v308_v23 = vpop.f32.mrf.mxu3 }
 0x1ce   :  { %v309_v24 = vadd.f32 %v533_v22, %v308_v23 }
 0x1d0   :  { %v312_v25 = vmax.f32 %v309_v24, 0.0 }
 0x1d2   :  { %v313_v26 = vpack.c.bf16 %v312_v25, %v312_v25 }
 0x1d4   :  { %499 = vmatmul.msk.bf16.vlgmr.msrb.gmra.mxu3 %vm326_vm4, %v313_v26 }
 0x1d5   :  { %v310_v27 = vpop.f32.mrf.mxu3 }
 0x257   :  { %v339_v29 = vpop.f32.mrf.mxu3 }
 0x258   :  { %v340_v30 = vadd.f32 %v534_v28, %v339_v29 }
 0x25a   :  { %v343_v31 = vmax.f32 %v340_v30, 0.0 }
 0x25c   :  { %v344_v32 = vpack.c.bf16 %v343_v31, %v343_v31 }
 0x25e   :  { %500 = vmatmul.msk.bf16.vlgmr.msra.gmra.mxu3 %vm350_vm5, %v344_v32 }
 0x25f   :  { %v341_v33 = vpop.f32.mrf.mxu3 }
 0x2e1   :  { %v367_v35 = vpop.f32.mrf.mxu3 }
 0x2e2   :  { %v368_v36 = vadd.f32 %v535_v34, %v367_v35 }
 0x2e4   :  { %v371_v37 = vpack.c.bf16 %v368_v36, %v368_v36 }
 0x2e6   :  { %372 = vst [vmem:[#allocation5] sm:$0x1] %v371_v37 }
 0x2e7   :  { %383 = dma.vmem_to_hbm [thread:$0]  %s379_s26, 16, %s381_s0, [#allocation4]  }
 0x2e9   :  { %v369_v38 = vpop.f32.mrf.mxu3 }
 0x2ea   :  { %588 = dma.done.wait [#allocation4], 16  }
 0x2eb   :  { %589 = vsyncadd [#allocation4], 4294967280 }
 0x2ec   :  { %388 = vsyncpa [#allocation3], 1 }
 0x2ed   :  { %389 = vsyncpa [#allocation4], 1 }

// kernel: tpu_custom_call.1
= control target key start
LH: loop header
LB: loop body
LE: loop exit
PB: predicated region body
PF: predicated region fallthrough
CT: control target
= control target key end

     0   :  { %15 = vsyncpa [#allocation3], 0  ;;  %s706_s0 = inlined_call_operand.vmem [shape: f32[2,128], index: 0, kind: input, shape index: {}]   ;;  %s707_s1 = inlined_call_operand.hbm [shape: bf16[128,256], index: 1, kind: input, shape index: {}]   ;;  %s708_s2 = inlined_call_operand.vmem [shape: bf16[128,32], index: 2, kind: input, shape index: {}]   ;;  %s709_s3 = inlined_call_operand.vmem [shape: f32[1,32], index: 3, kind: input, shape index: {}]   ;;  %s710_s4 = inlined_call_operand.vmem [shape: bf16[32,16], index: 4, kind: input, shape index: {}]   ;;  %s711_s5 = inlined_call_operand.vmem [shape: f32[1,16], index: 5, kind: input, shape index: {}]   ;;  %s712_s6 = inlined_call_operand.vmem [shape: bf16[16,8], index: 6, kind: input, shape index: {}]   ;;  %s713_s7 = inlined_call_operand.vmem [shape: f32[1,8], index: 7, kind: input, shape index: {}]   ;;  %s714_s8 = inlined_call_operand.vmem [shape: bf16[8,128], index: 8, kind: input, shape index: {}]   ;;  %s715_s9 = inlined_call_operand.vmem [shape: f32[1,128], index: 9, kind: input, shape index: {}]   ;;  %s716_s10 = inlined_call_operand.hbm [shape: bf16[2,128], index: 10, kind: output, shape index: {}]  }
   0x1   :  { %16 = vsyncpa [#allocation4], 0  ;;  %s23_s15 = sshll.u32 %s707_s1, 4  ;;  %s590_s16 = smov [#allocation2]   ;;  %s24_s15 = int_to_ptr.hbm [resolvable:$true] %s23_s15 }
   0x2   :  { %s25_s17 = sshll.u32 %s590_s16, 4  ;;  %s591_s18 = smov 128   ;;  %s26_s17 = int_to_ptr.vmem [resolvable:$true] %s25_s17 }
   0x3   :  { %s592_s19 = smov 8  }
   0x4   :  { %31 = dma.hbm_to_vmem [thread:$0]  %s24_s15, 2048, %s26_s17, [#allocation3], %s591_s18, %s591_s18, %s592_s19  }
   0x5   :  { %586 = dma.done.wait [#allocation3], 2048  }
   0x6   :  { %587 = vsyncadd [#allocation3], 4294965248  ;;  %v448_v0 = vld [vmem:[#allocation2 + $0x70] sm:$0xf]  ;;  %v516_v1 = vld [vmem:[#allocation2 + $0x74] sm:$0xf0] }
   0x7   :  { %v515_v2 = vld [vmem:[#allocation2 + $0x74] sm:$0xf]  ;;  %v449_v3 = vor.u32 %v516_v1, %v448_v0  ;;  %v450_v4 = vld [vmem:[#allocation2 + $0x78] sm:$0xf0]  ;;  %v440_v5 = vld [vmem:[#allocation2 + $0x60] sm:$0xf] }
   0x8   :  { %v514_v6 = vld [vmem:[#allocation2 + $0x64] sm:$0xf0]  ;;  %v453_v7 = vor.u32 %v515_v2, %v450_v4  ;;  %v513_v8 = vld [vmem:[#allocation2 + $0x64] sm:$0xf]  ;;  %v442_v9 = vld [vmem:[#allocation2 + $0x68] sm:$0xf0] }
   0x9   :  { %151 = vmatpush.bf16.msra.mxu0 %v449_v3  ;;  %v441_v10 = vor.u32 %v514_v6, %v440_v5  ;;  %v445_v11 = vor.u32 %v513_v8, %v442_v9  ;;  %v432_v12 = vld [vmem:[#allocation2 + $0x50] sm:$0xf]  ;;  %v512_v13 = vld [vmem:[#allocation2 + $0x54] sm:$0xf0]  ;;  %v511_v14 = vld [vmem:[#allocation2 + $0x54] sm:$0xf] }
   0xa   :  { %164 = vmatpush.bf16.msra.mxu1 %v453_v7  ;;  %v434_v15 = vld [vmem:[#allocation2 + $0x58] sm:$0xf0]  ;;  %v433_v16 = vor.u32 %v512_v13, %v432_v12  ;;  %v424_v18 = vld [vmem:[#allocation2 + $0x40] sm:$0xf]  ;;  %v510_v19 = vld [vmem:[#allocation2 + $0x44] sm:$0xf0] }
   0xb   :  { %v437_v17 = vor.u32 %v511_v14, %v434_v15  ;;  %v509_v20 = vld [vmem:[#allocation2 + $0x44] sm:$0xf]  ;;  %v426_v21 = vld [vmem:[#allocation2 + $0x48] sm:$0xf0]  ;;  %v416_v22 = vld [vmem:[#allocation2 + $0x30] sm:$0xf]  ;;  %v425_v23 = vor.u32 %v510_v19, %v424_v18 }
   0xc   :  { %v524_v24 = vld [vmem:[%s708_s2 + $0x38] sm:$0xff]  ;;  %v429_v25 = vor.u32 %v509_v20, %v426_v21  ;;  %v507_v27 = vld [vmem:[#allocation2 + $0x34] sm:$0xf]  ;;  %v408_v31 = vld [vmem:[#allocation2 + $0x20] sm:$0xf]  ;;  %vm295_vm2 = vcmask 261120  }
   0xd   :  { %152 = vmatpush.bf16.msra.mxu0 %v441_v10  ;;  %v508_v26 = vld [vmem:[#allocation2 + $0x34] sm:$0xf0]  ;;  %v418_v28 = vld [vmem:[#allocation2 + $0x38] sm:$0xf0]  ;;  %261 = vmatpush.bf16.msra.mxu2 %v524_v24  ;;  %v506_v32 = vld [vmem:[#allocation2 + $0x24] sm:$0xf0] }
   0xe   :  { %165 = vmatpush.bf16.msra.mxu1 %v445_v11  ;;  %v417_v29 = vor.u32 %v508_v26, %v416_v22  ;;  %v421_v30 = vor.u32 %v507_v27, %v418_v28  ;;  %v505_v33 = vld [vmem:[#allocation2 + $0x24] sm:$0xf]  ;;  %v410_v34 = vld [vmem:[#allocation2 + $0x28] sm:$0xf0]  ;;  %v409_v35 = vor.u32 %v506_v32, %v408_v31  ;;  %v400_v37 = vld [vmem:[#allocation2 + $0x10] sm:$0xf] }
   0xf   :  { %v413_v36 = vor.u32 %v505_v33, %v410_v34  ;;  %v504_v38 = vld [vmem:[#allocation2 + $0x14] sm:$0xf0]  ;;  %v503_v39 = vld [vmem:[#allocation2 + $0x14] sm:$0xf]  ;;  %v402_v40 = vld [vmem:[#allocation2 + $0x18] sm:$0xf0] }
  0x10   :  { %v401_v41 = vor.u32 %v504_v38, %v400_v37  ;;  %v405_v42 = vor.u32 %v503_v39, %v402_v40  ;;  %v392_v43 = vld [vmem:[#allocation2] sm:$0xf]  ;;  %v502_v44 = vld [vmem:[#allocation2 + $0x4] sm:$0xf0]  ;;  %v501_v45 = vld [vmem:[#allocation2 + $0x4] sm:$0xf] }
  0x11   :  { %153 = vmatpush.bf16.msra.mxu0 %v433_v16  ;;  %v394_v46 = vld [vmem:[#allocation2 + $0x8] sm:$0xf0]  ;;  %v393_v47 = vor.u32 %v502_v44, %v392_v43  ;;  %v53_v48 = vld [vmem:[%s706_s0] sm:$0x3]  ;;  %v523_v51 = vld [vmem:[%s708_s2 + $0x30] sm:$0xff]  ;;  %vm354_vm3 = vcmask 1043456  }
  0x12   :  { %166 = vmatpush.bf16.msra.mxu1 %v437_v17  ;;  %v397_v49 = vor.u32 %v501_v45, %v394_v46  ;;  %v54_v50 = vpack.c.bf16 %v53_v48, %v53_v48  ;;  %262 = vmatpush.bf16.msra.mxu2 %v523_v51  ;;  %v522_v52 = vld [vmem:[%s708_s2 + $0x28] sm:$0xff]  ;;  %v521_v53 = vld [vmem:[%s708_s2 + $0x20] sm:$0xff]  ;;  %v520_v54 = vld [vmem:[%s708_s2 + $0x18] sm:$0xff]  ;;  %vm326_vm4 = vcmask 130048   ;;  %vm350_vm5 = vcmask 64512   ;;  %s593_s25 = smov [#allocation5]  }
  0x13   :  { %v519_v55 = vld [vmem:[%s708_s2 + $0x10] sm:$0xff]  ;;  %v518_v56 = vld [vmem:[%s708_s2 + $0x8] sm:$0xff]  ;;  %v517_v57 = vld [vmem:[%s708_s2] sm:$0xff]  ;;  %s378_s26 = sshll.u32 %s593_s25, 4  ;;  %s380_s0 = sshll.u32 %s716_s10, 4  ;;  %s379_s26 = int_to_ptr.vmem [resolvable:$true] %s378_s26  ;;  %s381_s0 = int_to_ptr.hbm [resolvable:$true] %s380_s0 }
  0x14   :  { %v526_v58 = vld [vmem:[%s710_s4 + $0x8] sm:$0xff]  ;;  %v525_v13 = vld [vmem:[%s710_s4] sm:$0xff] }
  0x15   :  { %154 = vmatpush.bf16.msra.mxu0 %v425_v23  ;;  %305 = vmatpush.bf16.msra.mxu3 %v526_v58  ;;  %v527_v14 = vld [vmem:[%s712_s6] sm:$0xff] }
  0x16   :  { %167 = vmatpush.bf16.msra.mxu1 %v429_v25  ;;  %263 = vmatpush.bf16.msra.mxu2 %v522_v52  ;;  %v532_v15 = vld [vmem:[%s709_s3] ss:$0 sm:$0xff] }
  0x17   :  { %v345_v20 = vld [vmem:[%s714_s8] sm:$0xf] }
  0x18   :  { %v356_v21 = vsel %vm354_vm3, %v345_v20, 0  ;;  %v533_v22 = vld [vmem:[%s711_s5] ss:$0 sm:$0xff] }
  0x19   :  { %155 = vmatpush.bf16.msra.mxu0 %v417_v29  ;;  %306 = vmatpush.bf16.msra.mxu3 %v525_v13  ;;  %v534_v28 = vld [vmem:[%s713_s7] ss:$0 sm:$0xff] }
  0x1a   :  { %168 = vmatpush.bf16.msra.mxu1 %v421_v30  ;;  %264 = vmatpush.bf16.msra.mxu2 %v521_v53  ;;  %v535_v34 = vld [vmem:[%s715_s9] ss:$0 sm:$0xff] }
  0x1d   :  { %156 = vmatpush.bf16.msra.mxu0 %v409_v35  ;;  %337 = vmatpush.bf16.msrb.mxu3 %v527_v14 }
  0x1e   :  { %169 = vmatpush.bf16.msra.mxu1 %v413_v36  ;;  %265 = vmatpush.bf16.msra.mxu2 %v520_v54 }
  0x21   :  { %157 = vmatpush.bf16.msra.mxu0 %v401_v41 }
  0x22   :  { %170 = vmatpush.bf16.msra.mxu1 %v405_v42  ;;  %266 = vmatpush.bf16.msra.mxu2 %v519_v55 }
  0x25   :  { %158 = vmatpush.bf16.msra.mxu0 %v393_v47 }
  0x26   :  { %171 = vmatpush.bf16.msra.mxu1 %v397_v49  ;;  %267 = vmatpush.bf16.msra.mxu2 %v518_v56 }
  0x28   :  { %159 = vmatmul.bf16.vlgmr.msra.gmra.mxu0 %v54_v50 }
  0x29   :  { %172 = vmatmul.bf16.vlgmr.msra.gmra.mxu1 %v54_v50 }
  0x2a   :  { %268 = vmatpush.bf16.msra.mxu2 %v517_v57 }
  0xa5   :  { %v160_v59 = vpop.f32.mrf.mxu0 }
  0xa6   :  { %v177_v60 = vmul.f32 %v160_v59, %v160_v59  ;;  %v173_v61 = vpop.f32.mrf.mxu1 }
  0xa7   :  { %v178_v62 = vmul.f32 %v173_v61, %v173_v61 }
  0xa9   :  { %v179_v63 = vadd.f32 %v178_v62, %v177_v60 }
  0xab   :  { %536 = vrsqrt.f32 %v179_v63  ;;  %vm187_vm0 = vcmp.eq.f32.partialorder %v179_v63, inf  ;;  %v190_v9 = vand.u32 2147483648, %v179_v63  ;;  %vm189_vm1 = vcmp.eq.f32.partialorder %v179_v63, 0.0 }
  0xad   :  { %v162_v0 = vpop.f32.mrf.mxu0 }
  0xae   :  { %v175_v1 = vpop.f32.mrf.mxu1 }
  0xb1   :  { %v537_v2 = vpop.eup %536 }
  0xb2   :  { %v181_v3 = vmul.f32 %v537_v2, %v179_v63 }
  0xb4   :  { %v182_v4 = vmul.f32 %v537_v2, %v181_v3 }
  0xb6   :  { %v183_v5 = vmul.f32 0.5, %v182_v4 }
  0xb8   :  { %v184_v6 = vsub.f32 1.5, %v183_v5 }
  0xba   :  { %v185_v7 = vmul.f32 %v537_v2, %v184_v6 }
  0xbc   :  { %v186_v8 = vmul.f32 %v185_v7, %v179_v63 }
  0xbe   :  { %v188_v10 = vsel %vm187_vm0, %v179_v63, %v186_v8 }
  0xbf   :  { %v191_v11 = vsel %vm189_vm1, %v190_v9, %v188_v10 }
  0xc0   :  { %v192_v12 = vpack.c.bf16 %v191_v11, %v191_v11 }
  0xc2   :  { %269 = vmatmul.bf16.vlgmr.msra.gmra.mxu2 %v192_v12 }
 0x145   :  { %v270_v16 = vpop.f32.mrf.mxu2 }
 0x146   :  { %v271_v17 = vadd.f32 %v532_v15, %v270_v16 }
 0x148   :  { %v274_v18 = vpack.c.bf16 %v271_v17, %v271_v17 }
 0x14a   :  { %494 = vmatmul.msk.bf16.vlgmr.msra.gmra.mxu3 %vm295_vm2, %v274_v18 }
 0x14b   :  { %365 = vmatpush.bf16.msra.mxu3 %v356_v21 }
 0x14d   :  { %v272_v19 = vpop.f32.mrf.mxu2 }
 0x1cd   :  { %v308_v23 = vpop.f32.mrf.mxu3 }
 0x1ce   :  { %v309_v24 = vadd.f32 %v533_v22, %v308_v23 }
 0x1d0   :  { %v312_v25 = vmax.f32 %v309_v24, 0.0 }
 0x1d2   :  { %v313_v26 = vpack.c.bf16 %v312_v25, %v312_v25 }
 0x1d4   :  { %499 = vmatmul.msk.bf16.vlgmr.msrb.gmra.mxu3 %vm326_vm4, %v313_v26 }
 0x1d5   :  { %v310_v27 = vpop.f32.mrf.mxu3 }
 0x257   :  { %v339_v29 = vpop.f32.mrf.mxu3 }
 0x258   :  { %v340_v30 = vadd.f32 %v534_v28, %v339_v29 }
 0x25a   :  { %v343_v31 = vmax.f32 %v340_v30, 0.0 }
 0x25c   :  { %v344_v32 = vpack.c.bf16 %v343_v31, %v343_v31 }
 0x25e   :  { %500 = vmatmul.msk.bf16.vlgmr.msra.gmra.mxu3 %vm350_vm5, %v344_v32 }
 0x25f   :  { %v341_v33 = vpop.f32.mrf.mxu3 }
 0x2e1   :  { %v367_v35 = vpop.f32.mrf.mxu3 }
 0x2e2   :  { %v368_v36 = vadd.f32 %v535_v34, %v367_v35 }
 0x2e4   :  { %v371_v37 = vpack.c.bf16 %v368_v36, %v368_v36 }
 0x2e6   :  { %372 = vst [vmem:[#allocation5] sm:$0x1] %v371_v37 }
 0x2e7   :  { %383 = dma.vmem_to_hbm [thread:$0]  %s379_s26, 16, %s381_s0, [#allocation4]  }
 0x2e9   :  { %v369_v38 = vpop.f32.mrf.mxu3 }
 0x2ea   :  { %588 = dma.done.wait [#allocation4], 16  }
 0x2eb   :  { %589 = vsyncadd [#allocation4], 4294967280 }
 0x2ec   :  { %388 = vsyncpa [#allocation3], 1 }
 0x2ed   :  { %389 = vsyncpa [#allocation4], 1 }

</bundles_post_ra>
